<compile_context>
chip_gen: v6e
topology: v6e:2x2x1
jax: 0.10.0
libtpu: 0.0.40
codegen_flags: <defaults>
</compile_context>

<pallas_src>
import math

import jax
import jax.numpy as jnp
from jax.experimental import pallas as pl
from jax.experimental.pallas import tpu as pltpu

LANE = 128
SUBLANE = 8


def _round_up(x, m):
    return ((x + m - 1) // m) * m


# --------------------------------------------------------------------------- kernel
def batch_autoencoder_kernel(x_ref, w_enc_ref, b_enc_ref, w_dec_ref, b_dec_ref, out_ref):
    """One row tile of the fused 2-matmul autoencoder.

    x_ref      : (tm, in_dim)        input rows in their HBM dtype (cast in-kernel)
    w_enc_ref  : (in_dim, dz_p)      fused encoder weight (compute dtype)
    b_enc_ref  : (1, dz_p)           fused encoder bias (f32)
    w_dec_ref  : (dz_p, input_size)  fused decoder weight (compute dtype)
    b_dec_ref  : (1, input_size)     fused decoder bias (f32)
    out_ref    : (tm, input_size)    output (bf16 fast path / f32 exact path)
    """
    w_enc = w_enc_ref[...]
    w_dec = w_dec_ref[...]

    # In-kernel cast to the compute dtype (no wrapper-side materialization of x).
    x = x_ref[...].astype(w_enc.dtype)

    # Encoder: (tm, in_dim) @ (in_dim, dz_p) + b_enc, f32 MXU accumulation.
    z = jnp.dot(x, w_enc, preferred_element_type=jnp.float32) + b_enc_ref[...]

    # Decoder: (tm, dz_p) @ (dz_p, input_size) + b_dec, f32 MXU accumulation.
    y = jnp.dot(z.astype(w_dec.dtype), w_dec,
                preferred_element_type=jnp.float32) + b_dec_ref[...]

    out_ref[...] = y.astype(out_ref.dtype)


# --------------------------------------------------------------------------- index maps
def _row_tile_map(i):
    return (i, 0)


def _resident_map(i):
    return (0, 0)


# --------------------------------------------------------------------------- params
def init_params(key, d_z, input_size, batch_size, dtype=jnp.float32):
    """PyTorch-Linear-style init (uniform +/- 1/sqrt(fan_in)).

    Weights stored as [in_features, out_features] (transposed vs torch)."""
    dims = [
        (input_size + batch_size, 128),  # encoder[0]
        (128, 64),                       # encoder[1]
        (64, d_z),                       # encoder[2]
        (d_z, 64),                       # decoder[0]
        (64, 128),                       # decoder[1]
        (128, input_size),               # decoder[2]
    ]
    params = []
    for fan_in, fan_out in dims:
        key, kw, kb = jax.random.split(key, 3)
        bound = 1.0 / math.sqrt(fan_in)
        w = jax.random.uniform(kw, (fan_in, fan_out), dtype, minval=-bound, maxval=bound)
        b = jax.random.uniform(kb, (1, fan_out), dtype, minval=-bound, maxval=bound)
        params.append((w, b))
    return params


def fuse_params(params, compute_dtype):
    """Exact offline affine fusion of the activation-free chain (done in f32).

    encoder: h3 = x @ (W1@W2@W3) + ((b1@W2 + b2)@W3 + b3)
    decoder: y  = z @ (W4@W5@W6) + ((b4@W5 + b5)@W6 + b6)

    d_z is zero-padded to a sublane multiple (zero enc-cols / dec-rows -> math
    unchanged).  Fused weights are cast to the compute dtype only at the very
    end; fused biases stay f32 (added to the f32 accumulator)."""
    params_f32 = [(w.astype(jnp.float32), b.astype(jnp.float32)) for w, b in params]

    def fold(layers):
        w, b = layers[0]
        for wi, bi in layers[1:]:
            b = b @ wi + bi
            w = w @ wi
        return w, b

    w_enc, b_enc = fold(params_f32[:3])
    w_dec, b_dec = fold(params_f32[3:])

    d_z = w_enc.shape[1]
    dz_p = _round_up(d_z, SUBLANE)
    if dz_p != d_z:
        w_enc = jnp.pad(w_enc, ((0, 0), (0, dz_p - d_z)))
        b_enc = jnp.pad(b_enc, ((0, 0), (0, dz_p - d_z)))
        w_dec = jnp.pad(w_dec, ((0, dz_p - d_z), (0, 0)))

    return (w_enc.astype(compute_dtype), b_enc,
            w_dec.astype(compute_dtype), b_dec), dz_p


# --------------------------------------------------------------------------- wrapper
def batch_autoencoder_forward(x, params, d_z, input_size, batch_size,
                              *, tm=1024, compute_dtype=jnp.bfloat16, out_dtype=None):
    """Pallas forward pass matching torch's view(-1, in_dim) -> 6 Linears -> view.

    compute_dtype=float32 reproduces the module's math; bf16 (default) is the
    bandwidth-optimized fast path (f32 MXU accumulation, bf16 output)."""
    if out_dtype is None:
        out_dtype = compute_dtype
    in_dim = input_size + batch_size
    x2d = x.reshape(-1, in_dim)                  # the module's .view(-1, in_dim)
    n = x2d.shape[0]

    (w_enc, b_enc, w_dec, b_dec), dz_p = fuse_params(params, compute_dtype)

    # --- row tiling: sublane-aligned, no ragged tail, even step count when >1 ---
    n8 = _round_up(max(n, 1), SUBLANE)
    if n8 <= tm:
        steps = 1
        tm_eff = n8
    else:
        steps = pl.cdiv(n8, tm)
        if steps % 2:                            # balanced work for v7x's 2 TCs
            steps += 1
        tm_eff = _round_up(pl.cdiv(n8, steps), SUBLANE)
    n_pad = steps * tm_eff

    # Only copy x when N is ragged; the common (aligned) case streams x directly
    # from HBM in its original dtype -- the bf16 cast happens inside the kernel.
    if n_pad != n:
        x2d = jnp.pad(x2d, ((0, n_pad - n), (0, 0)))

    flat_params = (w_enc, b_enc, w_dec, b_dec)
    in_specs = [pl.BlockSpec((tm_eff, in_dim), _row_tile_map)]
    in_specs += [pl.BlockSpec(p.shape, _resident_map) for p in flat_params]
    out_specs = pl.BlockSpec((tm_eff, input_size), _row_tile_map)

    # --- honest cost estimate + VMEM sizing for the fused / bf16-out kernel ---
    c_bytes = jnp.dtype(compute_dtype).itemsize
    o_bytes = jnp.dtype(out_dtype).itemsize
    x_bytes = jnp.dtype(x2d.dtype).itemsize
    param_bytes = sum(int(t.size) * t.dtype.itemsize for t in flat_params)

    flops = 2 * n_pad * in_dim * dz_p + 2 * n_pad * dz_p * input_size \
        + n_pad * (dz_p + input_size)
    io_bytes = n_pad * in_dim * x_bytes + n_pad * input_size * o_bytes + param_bytes
    cost = pl.CostEstimate(flops=int(flops), transcendentals=0,
                           bytes_accessed=int(io_bytes))

    x_tile = tm_eff * in_dim * x_bytes
    out_tile = tm_eff * input_size * o_bytes
    interm = (tm_eff * in_dim * c_bytes            # in-kernel bf16 copy of x
              + tm_eff * dz_p * (4 + c_bytes)      # z (f32 acc + cast)
              + tm_eff * input_size * 4)           # y f32 acc before the store cast
    need = 2 * (x_tile + out_tile) + 2 * param_bytes + interm + (4 << 20)
    vmem_limit = int(min(max(need, 32 << 20), 96 << 20))

    out = pl.pallas_call(
        batch_autoencoder_kernel,
        out_shape=jax.ShapeDtypeStruct((n_pad, input_size), out_dtype),
        grid=(steps,),
        in_specs=in_specs,
        out_specs=out_specs,
        compiler_params=pltpu.CompilerParams(
            dimension_semantics=("parallel",),
            vmem_limit_bytes=vmem_limit,
        ),
        cost_estimate=cost,
    )(x2d, *flat_params)

    return out[:n].reshape(-1, input_size)       # matches decoded.view(-1, input_size)


# --------------------------------------------------------------------------- refs
def reference_forward_f32(x, params, input_size, batch_size):
    """Pure-JAX f32 per-layer reference matching the PyTorch module's math."""
    h = x.reshape(-1, input_size + batch_size).astype(jnp.float32)
    for w, b in params:
        h = h @ w.astype(jnp.float32) + b.astype(jnp.float32)
    return h.reshape(-1, input_size)


def reference_forward_fused(x, params, input_size, batch_size, compute_dtype):
    """Pure-JAX replica of the kernel's fused, mixed-precision math."""
    in_dim = input_size + batch_size
    (w_enc, b_enc, w_dec, b_dec), _ = fuse_params(params, compute_dtype)
    h = x.reshape(-1, in_dim).astype(compute_dtype)
    z = jnp.dot(h, w_enc, preferred_element_type=jnp.float32) + b_enc
    y = jnp.dot(z.astype(compute_dtype), w_dec,
                preferred_element_type=jnp.float32) + b_dec
    return y.reshape(-1, input_size)


# --------------------------------------------------------------------------- main
if __name__ == "__main__":
    # Small shapes consistent with the module (defaults d_z=10, input_size=1024,
    # batch_size=10 scaled down for a quick test).
    d_z = 8
    input_size = 256
    batch_size = 8          # "batch" one-hot width appended to the features, not N
    n_rows = 16

    key = jax.random.PRNGKey(0)
    key, kx = jax.random.split(key)
    x = jax.random.normal(kx, (n_rows, input_size + batch_size), jnp.float32)
    params = init_params(key, d_z, input_size, batch_size)

    ref_f32 = reference_forward_f32(x, params, input_size, batch_size)

    # 1) f32 compute path: matches the PyTorch module's math (fused exactly).
    out_f32 = jax.block_until_ready(
        batch_autoencoder_forward(x, params, d_z, input_size, batch_size,
                                  compute_dtype=jnp.float32))
    assert out_f32.shape == (n_rows, input_size), out_f32.shape
    assert jnp.allclose(out_f32, ref_f32, atol=1e-3, rtol=1e-3), "f32 kernel mismatch"

    # 2) bf16 fast path (default): bf16 weights/activations/output, f32 MXU accum.
    out_bf16 = jax.block_until_ready(
        batch_autoencoder_forward(x, params, d_z, input_size, batch_size))
    ref_bf16 = reference_forward_fused(x, params, input_size, batch_size, jnp.bfloat16)
    assert out_bf16.shape == (n_rows, input_size), out_bf16.shape
    assert out_bf16.dtype == jnp.bfloat16, out_bf16.dtype
    assert jnp.allclose(out_bf16.astype(jnp.float32), ref_bf16,
                        atol=2e-2, rtol=2e-2), "bf16 kernel mismatch"
    assert jnp.allclose(out_bf16.astype(jnp.float32), ref_f32,
                        atol=1e-1, rtol=1e-1), "bf16 drift vs f32 ref"

    # 3) Multi-step grid + ragged-row path (forces even step count and row padding).
    n_rows2 = 40
    key, kx2 = jax.random.split(key)
    x2 = jax.random.normal(kx2, (n_rows2, input_size + batch_size), jnp.float32)
    ref2 = reference_forward_f32(x2, params, input_size, batch_size)
    out2 = jax.block_until_ready(
        batch_autoencoder_forward(x2, params, d_z, input_size, batch_size,
                                  tm=16, compute_dtype=jnp.float32))
    assert out2.shape == (n_rows2, input_size), out2.shape
    assert jnp.allclose(out2, ref2, atol=1e-3, rtol=1e-3), "multi-tile kernel mismatch"

    print("KERNEL_OK")
</pallas_src>

<mosaic_0001>
module attributes {stable_mosaic.version = 11 : i64} {
  func.func @batch_autoencoder_kernel(%arg0: i32, %arg1: memref<16x264xf32, #tpu.memory_space<vmem>>, %arg2: memref<264x8xf32, #tpu.memory_space<vmem>>, %arg3: memref<1x8xf32, #tpu.memory_space<vmem>>, %arg4: memref<8x256xf32, #tpu.memory_space<vmem>>, %arg5: memref<1x256xf32, #tpu.memory_space<vmem>>, %arg6: memref<16x256xf32, #tpu.memory_space<vmem>>) attributes {dimension_semantics = [#tpu.dimension_semantics<parallel>], iteration_bounds = array<i64: 1>, scalar_prefetch = 0 : i64, scratch_operands = 0 : i64, tpu.core_type = #tpu.core_type<tc>, window_params = [{transform_indices = @transform_0, window_bounds = array<i64: 16, 264>}, {pipeline_mode = #tpu.pipeline_mode<synchronous>, transform_indices = @transform_1, window_bounds = array<i64: 264, 8>}, {pipeline_mode = #tpu.pipeline_mode<synchronous>, transform_indices = @transform_2, window_bounds = array<i64: 1, 8>}, {pipeline_mode = #tpu.pipeline_mode<synchronous>, transform_indices = @transform_3, window_bounds = array<i64: 8, 256>}, {pipeline_mode = #tpu.pipeline_mode<synchronous>, transform_indices = @transform_4, window_bounds = array<i64: 1, 256>}, {transform_indices = @transform_5, window_bounds = array<i64: 16, 256>}]} {
    %c0 = arith.constant 0 : index
    %c0_0 = arith.constant 0 : index
    %0 = vector.load %arg2[%c0, %c0_0] : memref<264x8xf32, #tpu.memory_space<vmem>>, vector<264x8xf32>
    %c0_1 = arith.constant 0 : index
    %c0_2 = arith.constant 0 : index
    %1 = vector.load %arg4[%c0_1, %c0_2] : memref<8x256xf32, #tpu.memory_space<vmem>>, vector<8x256xf32>
    %c0_3 = arith.constant 0 : index
    %c0_4 = arith.constant 0 : index
    %2 = vector.load %arg1[%c0_3, %c0_4] : memref<16x264xf32, #tpu.memory_space<vmem>>, vector<16x264xf32>
    %cst = arith.constant dense<0.000000e+00> : vector<16x8xf32>
    %3 = tpu.matmul %2, %0, %cst {dimension_numbers = #tpu.dot_dimension_numbers<[1], [0], [0], [1], [0, 0, 1, 1], [], []>} : vector<16x264xf32>, vector<264x8xf32>, vector<16x8xf32> -> vector<16x8xf32>
    %c0_5 = arith.constant 0 : index
    %c0_6 = arith.constant 0 : index
    %4 = vector.load %arg3[%c0_5, %c0_6] : memref<1x8xf32, #tpu.memory_space<vmem>>, vector<1x8xf32>
    %5 = vector.broadcast %4 : vector<1x8xf32> to vector<16x8xf32>
    %6 = arith.addf %3, %5 : vector<16x8xf32>
    %cst_7 = arith.constant dense<0.000000e+00> : vector<16x256xf32>
    %7 = tpu.matmul %6, %1, %cst_7 {dimension_numbers = #tpu.dot_dimension_numbers<[1], [0], [0], [1], [0, 0, 1, 1], [], []>} : vector<16x8xf32>, vector<8x256xf32>, vector<16x256xf32> -> vector<16x256xf32>
    %c0_8 = arith.constant 0 : index
    %c0_9 = arith.constant 0 : index
    %8 = vector.load %arg5[%c0_8, %c0_9] : memref<1x256xf32, #tpu.memory_space<vmem>>, vector<1x256xf32>
    %9 = vector.broadcast %8 : vector<1x256xf32> to vector<16x256xf32>
    %10 = arith.addf %7, %9 : vector<16x256xf32>
    %c0_10 = arith.constant 0 : index
    %c0_11 = arith.constant 0 : index
    %11 = vector.load %arg6[%c0_10, %c0_11] : memref<16x256xf32, #tpu.memory_space<vmem>>, vector<16x256xf32>
    tpu.vector_store %arg6[%c0_10, %c0_11], %10 {strides = array<i32>} : memref<16x256xf32, #tpu.memory_space<vmem>>, vector<16x256xf32>,
    return
  }
  func.func @transform_0(%arg0: i32) -> (i32, i32) {
    %c0_i32 = arith.constant 0 : i32
    %c0_i32_0 = arith.constant 0 : i32
    return %arg0, %c0_i32 : i32, i32
  }
  func.func @transform_1(%arg0: i32) -> (i32, i32) {
    %c0_i32 = arith.constant 0 : i32
    %c0_i32_0 = arith.constant 0 : i32
    %c0_i32_1 = arith.constant 0 : i32
    return %c0_i32, %c0_i32_0 : i32, i32
  }
  func.func @transform_2(%arg0: i32) -> (i32, i32) {
    %c0_i32 = arith.constant 0 : i32
    %c0_i32_0 = arith.constant 0 : i32
    %c0_i32_1 = arith.constant 0 : i32
    return %c0_i32, %c0_i32_0 : i32, i32
  }
  func.func @transform_3(%arg0: i32) -> (i32, i32) {
    %c0_i32 = arith.constant 0 : i32
    %c0_i32_0 = arith.constant 0 : i32
    %c0_i32_1 = arith.constant 0 : i32
    return %c0_i32, %c0_i32_0 : i32, i32
  }
  func.func @transform_4(%arg0: i32) -> (i32, i32) {
    %c0_i32 = arith.constant 0 : i32
    %c0_i32_0 = arith.constant 0 : i32
    %c0_i32_1 = arith.constant 0 : i32
    return %c0_i32, %c0_i32_0 : i32, i32
  }
  func.func @transform_5(%arg0: i32) -> (i32, i32) {
    %c0_i32 = arith.constant 0 : i32
    %c0_i32_0 = arith.constant 0 : i32
    return %arg0, %c0_i32 : i32, i32
  }
}

</mosaic_0001>

<bundles_post_ra>
// kernel: tpu_custom_call.1
= control target key start
LH: loop header
LB: loop body
LE: loop exit
PB: predicated region body
PF: predicated region fallthrough
CT: control target
= control target key end

     0   :  { %vm69_vm0 = vcmask 64512   ;;  %s588_s0 = inlined_call_operand.vmem [shape: f32[16,264], index: 0, kind: input, shape index: {}]   ;;  %s589_s1 = inlined_call_operand.vmem [shape: f32[264,8], index: 1, kind: input, shape index: {}]   ;;  %s590_s2 = inlined_call_operand.vmem [shape: f32[1,8], index: 2, kind: input, shape index: {}]   ;;  %s591_s3 = inlined_call_operand.vmem [shape: f32[8,256], index: 3, kind: input, shape index: {}]   ;;  %s592_s4 = inlined_call_operand.vmem [shape: f32[1,256], index: 4, kind: input, shape index: {}]   ;;  %s593_s5 = inlined_call_operand.hbm [shape: f32[16,256], index: 5, kind: output, shape index: {}]  }
   0x1   :  { %v52_v0 = vld [vmem:[%s589_s1 + $0xf8] sm:$0xff]  ;;  %v51_v2 = vld [vmem:[%s589_s1 + $0xf0] sm:$0xff]  ;;  %v50_v4 = vld [vmem:[%s589_s1 + $0xe8] sm:$0xff] }
   0x2   :  { %v36_v1 = vld [vmem:[%s589_s1 + $0x78] sm:$0xff]  ;;  %346 = vmatprep.subr.mxu0 %v52_v0  ;;  %v35_v3 = vld [vmem:[%s589_s1 + $0x70] sm:$0xff]  ;;  %v34_v5 = vld [vmem:[%s589_s1 + $0x68] sm:$0xff] }
   0x3   :  { %347 = vmatpush3.msra.mxu0 %v36_v1  ;;  %v49_v6 = vld [vmem:[%s589_s1 + $0xe0] sm:$0xff]  ;;  %v48_v8 = vld [vmem:[%s589_s1 + $0xd8] sm:$0xff]  ;;  %v47_v10 = vld [vmem:[%s589_s1 + $0xd0] sm:$0xff] }
   0x4   :  { %348 = vmatprep.subr.mxu0 %v51_v2  ;;  %v33_v7 = vld [vmem:[%s589_s1 + $0x60] sm:$0xff]  ;;  %v32_v9 = vld [vmem:[%s589_s1 + $0x58] sm:$0xff]  ;;  %v31_v11 = vld [vmem:[%s589_s1 + $0x50] sm:$0xff] }
   0x5   :  { %349 = vmatpush3.msra.mxu0 %v35_v3  ;;  %v46_v12 = vld [vmem:[%s589_s1 + $0xc8] sm:$0xff]  ;;  %v53_v15 = vld [vmem:[%s589_s1 + $0x100] sm:$0xff]  ;;  %v58_v16 = vld [vmem:[%s588_s0 + $0x10] sm:$0xff] }
   0x6   :  { %350 = vmatprep.subr.mxu0 %v50_v4  ;;  %v57_v13 = vld [vmem:[%s588_s0 + $0x8] sm:$0xff]  ;;  %v45_v17 = vld [vmem:[%s589_s1 + $0xc0] sm:$0xff]  ;;  %387 = vmatprep.subr.mxu1 %v53_v15 }
   0x7   :  { %351 = vmatpush3.msra.mxu0 %v34_v5  ;;  %v30_v14 = vld [vmem:[%s589_s1 + $0x48] sm:$0xff]  ;;  %140 = vmatprep.mubr.f32.mxu0 %v57_v13  ;;  %v29_v19 = vld [vmem:[%s589_s1 + $0x40] sm:$0xff] }
   0x8   :  { %352 = vmatprep.subr.mxu0 %v49_v6  ;;  %v61_v18 = vld [vmem:[%s588_s0 + $0x28] sm:$0xff]  ;;  %388 = vmatpush3.msra.mxu1 %v53_v15 }
   0x9   :  { %353 = vmatpush3.msra.mxu0 %v33_v7 }
   0xa   :  { %354 = vmatprep.subr.mxu0 %v48_v8 }
   0xb   :  { %355 = vmatpush3.msra.mxu0 %v32_v9 }
   0xc   :  { %356 = vmatprep.subr.mxu0 %v47_v10 }
   0xd   :  { %357 = vmatpush3.msra.mxu0 %v31_v11 }
   0xe   :  { %358 = vmatprep.subr.mxu0 %v46_v12 }
   0xf   :  { %10 = vsyncpa [#allocation3], 0  ;;  %359 = vmatpush3.msra.mxu0 %v30_v14  ;;  %v44_v20 = vld [vmem:[%s589_s1 + $0xb8] sm:$0xff]  ;;  %389 = vmatprep.mubr.msk.f32.mxu1 %vm69_vm0, %v58_v16  ;;  %v43_v22 = vld [vmem:[%s589_s1 + $0xb0] sm:$0xff]  ;;  %v418_v41 = vmov 0.0   ;;  %v228_v55 = vlaneseq }
  0x10   :  { %360 = vmatprep.subr.mxu0 %v45_v17  ;;  %v28_v21 = vld [vmem:[%s589_s1 + $0x38] sm:$0xff]  ;;  %390 = vmatmul.mubr.msk.f32.vlgmr.msra.gmra.mxu1 %vm69_vm0, %v61_v18  ;;  %v27_v23 = vld [vmem:[%s589_s1 + $0x30] sm:$0xff]  ;;  %v42_v24 = vld [vmem:[%s589_s1 + $0xa8] sm:$0xff] }
  0x11   :  { %361 = vmatpush3.msra.mxu0 %v29_v19  ;;  %v26_v25 = vld [vmem:[%s589_s1 + $0x28] sm:$0xff]  ;;  %v41_v26 = vld [vmem:[%s589_s1 + $0xa0] sm:$0xff]  ;;  %v40_v28 = vld [vmem:[%s589_s1 + $0x98] sm:$0xff]  ;;  %308 = vmatprep.mubr.f32.mxu1 %v418_v41  ;;  %v229_v56 = vshrl.u32 %v228_v55, 7 }
  0x12   :  { %362 = vmatprep.subr.mxu0 %v44_v20  ;;  %v25_v27 = vld [vmem:[%s589_s1 + $0x20] sm:$0xff]  ;;  %v24_v29 = vld [vmem:[%s589_s1 + $0x18] sm:$0xff]  ;;  %v39_v30 = vld [vmem:[%s589_s1 + $0x90] sm:$0xff] }
  0x13   :  { %363 = vmatpush3.msra.mxu0 %v28_v21  ;;  %v23_v31 = vld [vmem:[%s589_s1 + $0x10] sm:$0xff]  ;;  %v38_v32 = vld [vmem:[%s589_s1 + $0x88] sm:$0xff]  ;;  %v37_v34 = vld [vmem:[%s589_s1 + $0x80] sm:$0xff]  ;;  %v230_v57 = vsub.s32 0, %v229_v56  ;;  %v234_v59 = vsub.s32 1, %v229_v56 }
  0x14   :  { %364 = vmatprep.subr.mxu0 %v43_v22  ;;  %v22_v33 = vld [vmem:[%s589_s1 + $0x8] sm:$0xff]  ;;  %v21_v35 = vld [vmem:[%s589_s1] sm:$0xff]  ;;  %v59_v38 = vld [vmem:[%s588_s0 + $0x18] sm:$0xff] }
  0x15   :  { %365 = vmatpush3.msra.mxu0 %v27_v23  ;;  %v56_v36 = vld [vmem:[%s588_s0] sm:$0xff]  ;;  %v55_v39 = vld [vmem:[%s591_s3 + $0x8] sm:$0xff] }
  0x16   :  { %366 = vmatprep.subr.mxu0 %v42_v24  ;;  %v60_v37 = vld [vmem:[%s588_s0 + $0x20] sm:$0xff]  ;;  %274 = vmatprep.subr.mxu1 %v55_v39 }
  0x17   :  { %367 = vmatpush3.msra.mxu0 %v26_v25  ;;  %v54_v40 = vld [vmem:[%s591_s3] sm:$0xff] }
  0x18   :  { %368 = vmatprep.subr.mxu0 %v41_v26  ;;  %275 = vmatpush1.msra.mxu1 %v54_v40  ;;  %v341_v45 = vld [vmem:[%s590_s2] ss:$0 sm:$0xff]  ;;  %s419_s2 = smov [#allocation2]  }
  0x19   :  { %369 = vmatpush3.msra.mxu0 %v25_v27  ;;  %v226_v58 = vld [vmem:[%s592_s4] sm:$0x3]  ;;  %s330_s26 = sshll.u32 %s419_s2, 4  ;;  %s331_s26 = int_to_ptr.vmem [resolvable:$true] %s330_s26 }
  0x1a   :  { %370 = vmatprep.subr.mxu0 %v40_v28  ;;  %v231_v60 = vrot.slane %v226_v58, %v230_v57  ;;  %v235_v61 = vrot.slane %v226_v58, %v234_v59  ;;  %s396_s27 = scalar_lea.vmem %s331_s26, 512  ;;  %p401_p1 = scmp.lt.s32.totalorder %s331_s26, %s331_s26 }
  0x1b   :  { %371 = vmatpush3.msra.mxu0 %v24_v29  ;;  %p397_p0 = scmp.ne.s32.totalorder %s331_s26, %s396_s27  ;;  %p402_p2 = scmp.lt.s32.totalorder %s396_s27, %s396_s27 }
  0x1c   :  { %372 = vmatprep.subr.mxu0 %v39_v30 }
  0x1d   :  { %373 = vmatpush3.msra.mxu0 %v23_v31  ;;  %p403_p3 = por %p402_p2, %p401_p1 }
  0x1e   :  { %374 = vmatprep.subr.mxu0 %v38_v32 }
  0x1f   :  { %375 = vmatpush3.msra.mxu0 %v22_v33  ;;  %p404_p4 = pnand %p403_p3, %p397_p0 }
  0x20   :  { %376 = vmatprep.subr.mxu0 %v37_v34 }
  0x21   :  { %377 = vmatpush3.msra.mxu0 %v21_v35 }
  0x22   :  { %141 = vmatmul.mubr.f32.vlgmr.msra.gmra.mxu0 %v56_v36 }
  0x23   :  { %145 = vmatprep.mubr.f32.mxu0 %v60_v37 }
  0x26   :  { %146 = vmatmul.mubr.f32.gmra.mxu0 %v59_v38 }
  0xd0   :  { %v391_v44 = vpop.f32.mrf.mxu1 }
  0xd2   :  { %v217_v49 = vpop.f32.mrf.mxu1 }
  0xe2   :  { %v378_v42 = vpop.f32.mrf.mxu0 }
  0xe4   :  { %v379_v43 = vpop.f32.mrf.mxu0 }
  0xe5   :  { %v380_v46 = vadd.f32 %v379_v43, %v378_v42 }
  0xe6   :  { %v381_v47 = vpop.f32.mrf.mxu0 }
  0xe7   :  { %v143_v48 = vadd.f32 %v380_v46, %v341_v45 }
  0xe8   :  { %v382_v50 = vpop.f32.mrf.mxu0 }
  0xe9   :  { %v218_v51 = vadd.f32 %v217_v49, %v143_v48  ;;  %v383_v52 = vadd.f32 %v382_v50, %v381_v47 }
  0xeb   :  { %v148_v53 = vadd.f32 %v383_v52, %v341_v45  ;;  %344 = vmatmul.mubr.msk.f32.vlgmr.msra.gmra.mxu1 %vm69_vm0, %v218_v51 }
  0xec   :  { %314 = vmatprep.mubr.f32.mxu1 %v418_v41 }
  0xed   :  { %v223_v54 = vadd.f32 %v391_v44, %v148_v53 }
  0xef   :  { %345 = vmatmul.mubr.msk.f32.gmra.mxu1 %vm69_vm0, %v223_v54 }
 0x1ab   :  { %v310_v62 = vpop.f32.mrf.mxu1 }
 0x1ac   :  { %v311_v63 = vadd.f32 %v310_v62, %v231_v60 }
 0x1ad   :  { %v312_v0 = vpop.f32.mrf.mxu1 }
 0x1ae   :  { %321 = vst [vmem:[#allocation2] sm:$0xff] %v311_v63  ;;  %v313_v1 = vadd.f32 %v312_v0, %v235_v61 }
 0x1af   :  { %v316_v2 = vpop.f32.mrf.mxu1 }
 0x1b0   :  { %322 = vst [vmem:[#allocation2 + $0x8] sm:$0xff] %v313_v1  ;;  %v317_v3 = vadd.f32 %v316_v2, %v231_v60 }
 0x1b1   :  { %v318_v4 = vpop.f32.mrf.mxu1 }
 0x1b2   :  { %323 = vst [vmem:[#allocation2 + $0x10] sm:$0xff] %v317_v3  ;;  %v319_v5 = vadd.f32 %v318_v4, %v235_v61 }
 0x1b4   :  { %324 = vst [vmem:[#allocation2 + $0x18] sm:$0xff] %v319_v5 }
 0x1b5   :  { %407 = shalt.err (!%p404_p4)
}
 0x1b6   :  { %s420_s4 = smov 256   ;;  %s421_s28 = smov 16  }
 0x1b7   :  { %336 = dma.vmem_to_hbm [thread:$0]  %s331_s26, 512, %s593_s5, [#allocation3], %s420_s4, %s420_s4, %s421_s28  }
 0x1b8   :  { %416 = dma.done.wait [#allocation3], 512  }
 0x1b9   :  { %417 = vsyncadd [#allocation3], 4294966784 }
 0x1ba   :  { %340 = vsyncpa [#allocation3], 1 }

</bundles_post_ra>
